<compile_context>
chip_gen: v7x
topology: tpu7x:2x2x1
jax: 0.10.0
libtpu: 0.0.40
codegen_flags: <defaults>
</compile_context>

<pallas_src>
import jax
import jax.numpy as jnp
from jax import lax
from jax.experimental import pallas as pl
from jax.experimental.pallas import tpu as pltpu

_NEG_BIG = float(-3.0e38)  # finite "minus infinity"


def _round_up(x, m):
    return -(-x // m) * m


# ---------------------------------------------------------------------------
# Host-side slab packer: all weights/selectors -> one bf16 slab, all biases /
# edge masks -> one f32 slab.  Each entry is addressed by a static (row, rows,
# cols) window sliced inside the kernel.
# ---------------------------------------------------------------------------
class _SlabPacker:
    def __init__(self, dtype):
        self.dtype = dtype
        self.items = []
        self.row = 0
        self.width = 1

    def add(self, arr):
        arr = jnp.asarray(arr)
        r, c = arr.shape
        ro = self.row
        self.items.append((arr, ro))
        self.row += _round_up(r, 8)
        self.width = max(self.width, c)
        return (ro, r, c)

    def finalize(self):
        W = _round_up(self.width, 128)
        R = _round_up(max(self.row, 8), 8)
        slab = jnp.zeros((R, W), self.dtype)
        for arr, ro in self.items:
            r, c = arr.shape
            slab = slab.at[ro:ro + r, 0:c].set(arr.astype(self.dtype))
        return slab


# ---------------------------------------------------------------------------
# Fused whole-network kernel (traced once per static config).
#   refs: x (L, B_tile*E) bf16 | weight slab bf16 | aux slab f32 | out (labels, B_tile)
# ---------------------------------------------------------------------------
def make_vdcnn_kernel(filters, top_k, B_tile, meta):

    def kernel(x_ref, w_ref, a_ref, o_ref):
        def ld(m):
            kind, ro, r, c = m
            ref = w_ref if kind == 'w' else a_ref
            return ref[ro:ro + r, 0:c]

        def conv_k3(xf, w_m, c_m, mask_l, mask_r, relu):
            # 'same' K=3 conv over per-batch lane segments, as one MXU matmul.
            C_in, N = xf.shape
            zero = jnp.zeros((C_in, 1), xf.dtype)
            x_prev = jnp.concatenate([zero, xf[:, :N - 1]], axis=1) * mask_l
            x_next = jnp.concatenate([xf[:, 1:], zero], axis=1) * mask_r
            im = jnp.concatenate([x_prev, xf, x_next], axis=0).astype(jnp.bfloat16)
            y = jnp.dot(ld(w_m), im, preferred_element_type=jnp.float32) + ld(c_m)
            return jnp.maximum(y, 0.0) if relu else y

        # ---------- stage 1: k=1 conv + ReLU, fused with the [0,2,1] permute ----------
        x = x_ref[...]                                              # (L, B_tile*E) bf16
        h = jnp.dot(x, ld(meta['w_bd']),
                    preferred_element_type=jnp.float32) + ld(meta['bias0'])
        block = jnp.maximum(h, 0.0)                                 # (L, B_tile*F0) f32
        Lb = filters[0][0]

        # ---------------------------- VDCNN blocks ----------------------------
        for sm, (F, _cnt) in zip(meta['stages'], filters):
            mask_l = ld(sm['mask_l'])
            mask_r = ld(sm['mask_r'])

            for inner in sm['inner']:                               # residual conv blocks
                y = conv_k3(block, inner['w1'], inner['c1'], mask_l, mask_r, True)
                y = conv_k3(y, inner['w2'], inner['c2'], mask_l, mask_r, True)
                block = y + block

            # conv_block first layer fused with the shortcut 1x1 conv (shared im2col).
            res = conv_k3(block, sm['w_cb1sc'], sm['c_cb1sc'], mask_l, mask_r, False)
            y1 = jnp.maximum(res[0:F, :], 0.0)                      # conv1 -> BN -> ReLU
            sc = res[F:2 * F, :]                                    # shortcut conv -> BN
            mid = conv_k3(y1, sm['w_cb2'], sm['c_cb2'], mask_l, mask_r, True)

            # stride-2 'same' downsample of both branches via host-built bf16 selectors.
            Lout = -(-Lb // 2)
            N_out = B_tile * Lout
            down = jnp.dot(sc.astype(jnp.bfloat16), ld(sm['g_conv']),
                           preferred_element_type=jnp.float32)      # (F, N_out)
            p3 = jnp.dot(mid.astype(jnp.bfloat16), ld(sm['g_pool']),
                         preferred_element_type=jnp.float32)        # (F, 3*N_out)
            pooled = jnp.maximum(jnp.maximum(p3[:, 0:N_out], p3[:, N_out:2 * N_out]),
                                 p3[:, 2 * N_out:3 * N_out])        # mid >= 0, so the
            blk = down + pooled                                     # zero (invalid-tap)
                                                                    # columns are inert.
            # 1x1 conv doubling channels + folded BN (no ReLU).
            block = jnp.dot(ld(sm['w_dbl']), blk.astype(jnp.bfloat16),
                            preferred_element_type=jnp.float32) + ld(sm['c_dbl'])
            Lb = Lout

        C_blk = block.shape[0]

        # ---------------- k-max pooling (vectorized over batch) ----------------
        # De-interleave lanes: (C, B_tile*Lb) -> (C, Lb*B_tile) so position-l slices are
        # contiguous lane-dense (C, B_tile) tiles.
        scat = jnp.dot(block.astype(jnp.bfloat16), ld(meta['g_deint']),
                       preferred_element_type=jnp.float32)
        S = [scat[:, l * B_tile:(l + 1) * B_tile] for l in range(Lb)]
        ranks = []
        for j in range(top_k):
            m = S[0]
            for l in range(1, Lb):
                m = jnp.maximum(m, S[l])
            ranks.append(m)
            if j + 1 < top_k:
                taken = jnp.zeros((C_blk, B_tile), jnp.float32)
                S_new = []
                for l in range(Lb):
                    hit = jnp.logical_and(S[l] == m, taken < 0.5)
                    S_new.append(jnp.where(hit, _NEG_BIG, S[l]))
                    taken = taken + jnp.where(hit, 1.0, 0.0)
                S = S_new

        # ---------------- dense + softmax (lane-major logits) ----------------
        V = jnp.concatenate(ranks, axis=0)                          # (top_k*C, B_tile)
        logits = jnp.dot(ld(meta['w_dense']), V.astype(jnp.bfloat16),
                         preferred_element_type=jnp.float32) + ld(meta['b_dense'])
        mx = jnp.max(logits, axis=0, keepdims=True)
        e = jnp.exp(logits - mx)
        denom = jnp.sum(e, axis=0, keepdims=True)
        o_ref[...] = e * pl.reciprocal(denom, approx=True)

    return kernel


# ---------------------------------------------------------------------------
# Host-side wrapper: layout prep + single pallas_call, under jax.jit.
# ---------------------------------------------------------------------------
def build_forward(E, L, filters, top_k, label_num, B, B_tile, meta):
    assert B % B_tile == 0
    assert L == E, "ConvolutionalBlock reuses embeddings_size as in_channels after the permute"
    n_steps = B // B_tile

    Lb, C_fin = filters[0][0], None
    for (F, cnt) in filters:
        if cnt > 1:
            assert F == E, "inner residual blocks require filter_num == embeddings_size"
        Lb = -(-Lb // 2)
        C_fin = 2 * F
    assert top_k <= Lb
    assert top_k * C_fin == E, "dense in_features (embeddings_size) must equal top_k * 2 * filters[-1][0]"
    if n_steps > 1:
        assert (B_tile * E) % 128 == 0 and B_tile % 128 == 0, \
            "multi-step grids need lane-dense tiles; prefer B_tile == B (grid=(1,))"

    kernel = make_vdcnn_kernel(filters, top_k, B_tile, meta)

    def forward(x, slab_w, slab_a):
        # (B, E, L) -> (L, B*E) bf16: seq-channels on sublanes, batch folded into lanes.
        x_seq = jnp.transpose(x, (2, 0, 1)).reshape(L, B * E).astype(jnp.bfloat16)
        out_t = pl.pallas_call(
            kernel,
            out_shape=jax.ShapeDtypeStruct((label_num, B), jnp.float32),
            grid=(n_steps,),
            in_specs=[pl.BlockSpec((L, B_tile * E), lambda i: (0, i)),
                      pl.BlockSpec(slab_w.shape, lambda i: (0, 0)),
                      pl.BlockSpec(slab_a.shape, lambda i: (0, 0))],
            out_specs=pl.BlockSpec((label_num, B_tile), lambda i: (0, i)),
            compiler_params=pltpu.CompilerParams(
                dimension_semantics=("parallel",),
                vmem_limit_bytes=32 * 1024 * 1024),
        )(x_seq, slab_w, slab_a)
        return out_t.T                                              # (B, label_num)

    return jax.jit(forward)


# ---------------------------------------------------------------------------
# Parameters: deterministic synthetic init (shapes follow the module __init__).
# ---------------------------------------------------------------------------
def init_params(key, embeddings_size, filters, label_num):
    E = embeddings_size
    keys = iter(jax.random.split(key, 256))

    def conv_w(co, ci, k):
        return (0.2 * jax.random.normal(next(keys), (co, ci, k), jnp.float32),
                0.2 * jax.random.normal(next(keys), (co,), jnp.float32))

    def bn(c):
        gamma = 1.0 + 0.1 * jax.random.normal(next(keys), (c,), jnp.float32)
        beta = 0.1 * jax.random.normal(next(keys), (c,), jnp.float32)
        mean = 0.1 * jax.random.normal(next(keys), (c,), jnp.float32)
        var = 1.0 + 0.1 * jnp.abs(jax.random.normal(next(keys), (c,), jnp.float32))
        scale = gamma / jnp.sqrt(var + 1e-5)     # folded eval-mode BatchNorm1d
        shift = beta - mean * scale
        return scale, shift

    p = {'conv': conv_w(filters[0][0], E, 1), 'blocks': []}
    for F, count in filters:
        bp = {'inner': []}
        for _ in range(count - 1):
            bp['inner'].append({'c1': conv_w(F, E, 3), 'bn1': bn(F),
                                'c2': conv_w(F, F, 3), 'bn2': bn(F)})
        bp['cb'] = {'c1': conv_w(F, E, 3), 'bn1': bn(F),
                    'c2': conv_w(F, F, 3), 'bn2': bn(F)}
        bp['sc'] = {'conv': conv_w(F, E, 1), 'bn': bn(F),
                    'conv1': conv_w(2 * F, F, 1), 'bn1': bn(2 * F)}
        p['blocks'].append(bp)
    p['dense'] = (0.2 * jax.random.normal(next(keys), (label_num, E), jnp.float32),
                  0.2 * jax.random.normal(next(keys), (label_num,), jnp.float32))
    return p


# ---------------------------------------------------------------------------
# Pack: fold bias + eval-BN into weights, build all layout/selection constants,
# and pack everything into one bf16 slab + one f32 slab.
# ---------------------------------------------------------------------------
def pack_params(params, filters, E, L, top_k, label_num, B_tile):
    wp = _SlabPacker(jnp.bfloat16)
    ap = _SlabPacker(jnp.float32)
    meta = {}

    def fold(w, b, scale, shift):
        # y = scale*(W*x + b) + shift  ->  W' = scale*W (flattened over taps), c' = scale*b + shift
        co, ci, K = w.shape
        wf = w * scale[:, None, None]
        wf = jnp.concatenate([wf[:, :, k] for k in range(K)], axis=1)   # (C_out, K*C_in)
        c = (scale * b + shift).reshape(co, 1)
        return wf, c

    # Stage 1: fold the (k=1 conv, ReLU, permute) into a block-diagonal matmul weight.
    w0, b0 = params['conv']
    F0 = w0.shape[0]
    W_bd = jnp.kron(jnp.eye(B_tile, dtype=jnp.float32), w0[:, :, 0].T)  # (Btile*E, Btile*F0)
    meta['w_bd'] = ('w',) + wp.add(W_bd)
    meta['bias0'] = ('a',) + ap.add(jnp.tile(b0, B_tile).reshape(1, B_tile * F0))

    Lb = F0
    meta['stages'] = []
    for bp, (F, _count) in zip(params['blocks'], filters):
        sm = {}
        N_in = B_tile * Lb
        col = jnp.arange(N_in)
        sm['mask_l'] = ('a',) + ap.add(jnp.where(col % Lb == 0, 0.0, 1.0).reshape(1, N_in))
        sm['mask_r'] = ('a',) + ap.add(jnp.where(col % Lb == Lb - 1, 0.0, 1.0).reshape(1, N_in))

        sm['inner'] = []
        for inner in bp['inner']:
            w1, c1 = fold(*inner['c1'], *inner['bn1'])
            w2, c2 = fold(*inner['c2'], *inner['bn2'])
            sm['inner'].append({'w1': ('w',) + wp.add(w1), 'c1': ('a',) + ap.add(c1),
                                'w2': ('w',) + wp.add(w2), 'c2': ('a',) + ap.add(c2)})

        # Fuse [conv_block.conv1 ; shortcut 1x1 conv] over the shared k=3 im2col.
        w1, c1 = fold(*bp['cb']['c1'], *bp['cb']['bn1'])                 # (F, 3*C_in)
        wsc, csc = fold(*bp['sc']['conv'], *bp['sc']['bn'])              # (F, C_in)
        C_in = wsc.shape[1]
        wsc_exp = jnp.concatenate([jnp.zeros((F, C_in)), wsc, jnp.zeros((F, C_in))], axis=1)
        sm['w_cb1sc'] = ('w',) + wp.add(jnp.concatenate([w1, wsc_exp], axis=0))
        sm['c_cb1sc'] = ('a',) + ap.add(jnp.concatenate([c1, csc], axis=0))
        w2, c2 = fold(*bp['cb']['c2'], *bp['cb']['bn2'])
        sm['w_cb2'] = ('w',) + wp.add(w2)
        sm['c_cb2'] = ('a',) + ap.add(c2)

        # Host-built stride-2 / 'same' max-pool selection matrices (bf16 constants).
        stride, pool = 2, 3
        Lout = -(-Lb // stride)
        N_out = B_tile * Lout
        pad_l = max((Lout - 1) * stride + pool - Lb, 0) // 2
        src_b = jnp.arange(N_in)[:, None] // Lb
        src_l = jnp.arange(N_in)[:, None] % Lb
        dst_b = jnp.arange(N_out)[None, :] // Lout
        dst_p = jnp.arange(N_out)[None, :] % Lout
        same_b = src_b == dst_b
        g_conv = (same_b & (src_l == dst_p * stride)).astype(jnp.float32)
        g_taps = []
        for t in range(pool):
            tap = dst_p * stride - pad_l + t
            g_taps.append((same_b & (src_l == tap) & (tap >= 0) & (tap < Lb)).astype(jnp.float32))
        sm['g_conv'] = ('w',) + wp.add(g_conv)
        sm['g_pool'] = ('w',) + wp.add(jnp.concatenate(g_taps, axis=1))

        wd, cd = fold(*bp['sc']['conv1'], *bp['sc']['bn1'])              # (2F, F) 1x1 conv
        sm['w_dbl'] = ('w',) + wp.add(wd)
        sm['c_dbl'] = ('a',) + ap.add(cd)
        meta['stages'].append(sm)
        Lb = Lout

    # k-max de-interleave selector: lane b*Lb+l  ->  lane l*B_tile+b.
    N_f = B_tile * Lb
    n = jnp.arange(N_f)[:, None]
    mcol = jnp.arange(Lb * B_tile)[None, :]
    g_de = ((n % Lb) == (mcol // B_tile)) & ((n // Lb) == (mcol % B_tile))
    meta['g_deint'] = ('w',) + wp.add(g_de.astype(jnp.float32))

    dw, db = params['dense']
    meta['w_dense'] = ('w',) + wp.add(dw)                                # (labels, top_k*C_fin)
    meta['b_dense'] = ('a',) + ap.add(db.reshape(label_num, 1))
    return wp.finalize(), ap.finalize(), meta, Lb


# ---------------------------------------------------------------------------
# Pure-JAX (non-Pallas) reference with identical semantics, f32 end-to-end.
# ---------------------------------------------------------------------------
def reference_forward(x, params, filters, top_k):
    def conv1d_same(x, w, b):
        K = w.shape[2]
        pad_l, pad_r = (K - 1) // 2, K // 2
        Lc = x.shape[2]
        xp = jnp.pad(x, ((0, 0), (0, 0), (pad_l, pad_r)))
        out = 0.0
        for k in range(K):
            out = out + jnp.einsum('oi,bil->bol', w[:, :, k], xp[:, :, k:k + Lc])
        return out + b[None, :, None]

    def bn(x, scale, shift):
        return x * scale[None, :, None] + shift[None, :, None]

    def conv_block(x, cb):
        (w1, b1), (s1, h1) = cb['c1'], cb['bn1']
        (w2, b2), (s2, h2) = cb['c2'], cb['bn2']
        y = jax.nn.relu(bn(conv1d_same(x, w1, b1), s1, h1))
        return jax.nn.relu(bn(conv1d_same(y, w2, b2), s2, h2))

    w0, b0 = params['conv']
    block = jnp.transpose(jax.nn.relu(conv1d_same(x, w0, b0)), (0, 2, 1))
    for bp in params['blocks']:
        for inner in bp['inner']:
            block = conv_block(block, inner) + block
        mid = conv_block(block, bp['cb'])
        (wsc, bsc), (ssc, hsc) = bp['sc']['conv'], bp['sc']['bn']
        sc = bn(conv1d_same(block, wsc, bsc), ssc, hsc)
        Lb, stride, pool = block.shape[2], 2, 3
        Lout = -(-Lb // stride)
        pad_needed = max((Lout - 1) * stride + pool - Lb, 0)
        pad_l = pad_needed // 2
        pad_r = pad_needed - pad_l
        down = sc[:, :, ::stride]
        midp = jnp.pad(mid, ((0, 0), (0, 0), (pad_l, pad_r)), constant_values=-jnp.inf)
        pooled = jnp.stack([jnp.max(midp[:, :, p * stride:p * stride + pool], axis=-1)
                            for p in range(Lout)], axis=-1)
        blk = down + pooled
        (w1x, b1x), (s1x, h1x) = bp['sc']['conv1'], bp['sc']['bn1']
        block = bn(conv1d_same(blk, w1x, b1x), s1x, h1x)
    vals = lax.top_k(block, top_k)[0]                          # (B, C, top_k) descending
    flat = jnp.transpose(vals, (0, 2, 1)).reshape(block.shape[0], -1)
    dw, db = params['dense']
    logits = flat @ dw.T + db
    return jax.nn.softmax(logits, axis=-1)


if __name__ == "__main__":
    B = 16            # batch
    B_TILE = 16       # grid=(1,): single-TC friendly (v5e/v6e); lane-dense 128-512 wide tiles
    E = 32            # embeddings_size (input channels)
    L = 32            # seq_len; must equal embeddings_size (ConvolutionalBlock reuses it
                      # as in_channels after the [0,2,1] permute)
    FILTERS = [[8, 1]]
    TOP_K = 2
    LABEL_NUM = 2     # dense in_features == E requires top_k * 2 * filters[-1][0] == E

    key = jax.random.PRNGKey(0)
    kx, kp = jax.random.split(key)
    x = jax.random.normal(kx, (B, E, L), jnp.float32)
    params = init_params(kp, E, FILTERS, LABEL_NUM)
    slab_w, slab_a, meta, _ = pack_params(params, FILTERS, E, L, TOP_K, LABEL_NUM, B_TILE)

    forward = build_forward(E, L, FILTERS, TOP_K, LABEL_NUM, B, B_TILE, meta)
    out = forward(x, slab_w, slab_a)
    out = jax.block_until_ready(out)

    assert out.shape == (B, LABEL_NUM)
    assert bool(jnp.all(jnp.isfinite(out)))
    assert bool(jnp.allclose(jnp.sum(out, axis=-1), 1.0, atol=1e-2))  # approx-recip softmax

    ref = reference_forward(x, params, FILTERS, TOP_K)
    err = float(jnp.max(jnp.abs(out - ref)))
    assert err < 5e-2, err  # bf16 MXU operands vs f32 reference

    print("KERNEL_OK")
</pallas_src>

<mosaic_0001>
module attributes {stable_mosaic.version = 11 : i64} {
  func.func @kernel(%arg0: i32, %arg1: memref<32x512xbf16, #tpu.memory_space<vmem>>, %arg2: memref<880x256xbf16, #tpu.memory_space<vmem>>, %arg3: memref<72x128xf32, #tpu.memory_space<vmem>>, %arg4: memref<2x16xf32, #tpu.memory_space<vmem>>) attributes {dimension_semantics = [#tpu.dimension_semantics<parallel>], iteration_bounds = array<i64: 1>, scalar_prefetch = 0 : i64, scratch_operands = 0 : i64, tpu.core_type = #tpu.core_type<tc>, window_params = [{transform_indices = @transform_0, window_bounds = array<i64: 32, 512>}, {pipeline_mode = #tpu.pipeline_mode<synchronous>, transform_indices = @transform_1, window_bounds = array<i64: 880, 256>}, {pipeline_mode = #tpu.pipeline_mode<synchronous>, transform_indices = @transform_2, window_bounds = array<i64: 72, 128>}, {transform_indices = @transform_3, window_bounds = array<i64: 2, 16>}]} {
    %c0 = arith.constant 0 : index
    %c0_0 = arith.constant 0 : index
    %0 = vector.load %arg1[%c0, %c0_0] : memref<32x512xbf16, #tpu.memory_space<vmem>>, vector<32x512xbf16>
    %c0_1 = arith.constant 0 : index
    %c0_2 = arith.constant 0 : index
    %1 = vector.load %arg2[%c0_1, %c0_2] : memref<880x256xbf16, #tpu.memory_space<vmem>>, vector<512x128xbf16>
    %cst = arith.constant dense<0.000000e+00> : vector<32x128xf32>
    %2 = tpu.matmul %0, %1, %cst {dimension_numbers = #tpu.dot_dimension_numbers<[1], [0], [0], [1], [0, 0, 1, 1], [], []>} : vector<32x512xbf16>, vector<512x128xbf16>, vector<32x128xf32> -> vector<32x128xf32>
    %c0_3 = arith.constant 0 : index
    %c0_4 = arith.constant 0 : index
    %3 = vector.load %arg3[%c0_3, %c0_4] : memref<72x128xf32, #tpu.memory_space<vmem>>, vector<1x128xf32>
    %4 = vector.broadcast %3 : vector<1x128xf32> to vector<32x128xf32>
    %5 = arith.addf %2, %4 : vector<32x128xf32>
    %cst_5 = arith.constant 0.000000e+00 : f32
    %6 = vector.broadcast %cst_5 : f32 to vector<32x128xf32>
    %7 = arith.maximumf %5, %6 : vector<32x128xf32>
    %c8 = arith.constant 8 : index
    %c0_6 = arith.constant 0 : index
    %8 = vector.load %arg3[%c8, %c0_6] : memref<72x128xf32, #tpu.memory_space<vmem>>, vector<1x128xf32>
    %c16 = arith.constant 16 : index
    %c0_7 = arith.constant 0 : index
    %9 = vector.load %arg3[%c16, %c0_7] : memref<72x128xf32, #tpu.memory_space<vmem>>, vector<1x128xf32>
    %cst_8 = arith.constant 0.000000e+00 : f32
    %10 = vector.broadcast %cst_8 : f32 to vector<32x1xf32>
    %11 = vector.extract_strided_slice %7 {offsets = [0, 0], sizes = [32, 127], strides = [1, 1]} : vector<32x128xf32> to vector<32x127xf32>
    %12 = tpu.concatenate %10, %11 in 1 : vector<32x1xf32>, vector<32x127xf32> -> vector<32x128xf32>
    %13 = vector.broadcast %8 : vector<1x128xf32> to vector<32x128xf32>
    %14 = arith.mulf %12, %13 : vector<32x128xf32>
    %15 = vector.extract_strided_slice %7 {offsets = [0, 1], sizes = [32, 127], strides = [1, 1]} : vector<32x128xf32> to vector<32x127xf32>
    %16 = tpu.concatenate %15, %10 in 1 : vector<32x127xf32>, vector<32x1xf32> -> vector<32x128xf32>
    %17 = vector.broadcast %9 : vector<1x128xf32> to vector<32x128xf32>
    %18 = arith.mulf %16, %17 : vector<32x128xf32>
    %19 = tpu.concatenate %14, %7, %18 in 0 : vector<32x128xf32>, vector<32x128xf32>, vector<32x128xf32> -> vector<96x128xf32>
    %20 = arith.truncf %19 : vector<96x128xf32> to vector<96x128xbf16>
    %c512 = arith.constant 512 : index
    %c0_9 = arith.constant 0 : index
    %21 = vector.load %arg2[%c512, %c0_9] : memref<880x256xbf16, #tpu.memory_space<vmem>>, vector<16x96xbf16>
    %cst_10 = arith.constant dense<0.000000e+00> : vector<16x128xf32>
    %22 = tpu.matmul %21, %20, %cst_10 {dimension_numbers = #tpu.dot_dimension_numbers<[1], [0], [0], [1], [0, 0, 1, 1], [], []>} : vector<16x96xbf16>, vector<96x128xbf16>, vector<16x128xf32> -> vector<16x128xf32>
    %c24 = arith.constant 24 : index
    %c0_11 = arith.constant 0 : index
    %23 = vector.load %arg3[%c24, %c0_11] : memref<72x128xf32, #tpu.memory_space<vmem>>, vector<16x1xf32>
    %24 = vector.broadcast %23 : vector<16x1xf32> to vector<16x128xf32>
    %25 = arith.addf %22, %24 : vector<16x128xf32>
    %26 = vector.extract_strided_slice %25 {offsets = [0, 0], sizes = [8, 128], strides = [1, 1]} : vector<16x128xf32> to vector<8x128xf32>
    %cst_12 = arith.constant 0.000000e+00 : f32
    %27 = vector.broadcast %cst_12 : f32 to vector<8x128xf32>
    %28 = arith.maximumf %26, %27 : vector<8x128xf32>
    %29 = vector.extract_strided_slice %25 {offsets = [8, 0], sizes = [8, 128], strides = [1, 1]} : vector<16x128xf32> to vector<8x128xf32>
    %cst_13 = arith.constant 0.000000e+00 : f32
    %30 = vector.broadcast %cst_13 : f32 to vector<8x1xf32>
    %31 = vector.extract_strided_slice %28 {offsets = [0, 0], sizes = [8, 127], strides = [1, 1]} : vector<8x128xf32> to vector<8x127xf32>
    %32 = tpu.concatenate %30, %31 in 1 : vector<8x1xf32>, vector<8x127xf32> -> vector<8x128xf32>
    %33 = vector.broadcast %8 : vector<1x128xf32> to vector<8x128xf32>
    %34 = arith.mulf %32, %33 : vector<8x128xf32>
    %35 = vector.extract_strided_slice %28 {offsets = [0, 1], sizes = [8, 127], strides = [1, 1]} : vector<8x128xf32> to vector<8x127xf32>
    %36 = tpu.concatenate %35, %30 in 1 : vector<8x127xf32>, vector<8x1xf32> -> vector<8x128xf32>
    %37 = vector.broadcast %9 : vector<1x128xf32> to vector<8x128xf32>
    %38 = arith.mulf %36, %37 : vector<8x128xf32>
    %39 = tpu.concatenate %34, %28, %38 in 0 : vector<8x128xf32>, vector<8x128xf32>, vector<8x128xf32> -> vector<24x128xf32>
    %40 = arith.truncf %39 : vector<24x128xf32> to vector<24x128xbf16>
    %c528 = arith.constant 528 : index
    %c0_14 = arith.constant 0 : index
    %41 = vector.load %arg2[%c528, %c0_14] : memref<880x256xbf16, #tpu.memory_space<vmem>>, vector<8x24xbf16>
    %cst_15 = arith.constant dense<0.000000e+00> : vector<8x128xf32>
    %42 = tpu.matmul %41, %40, %cst_15 {dimension_numbers = #tpu.dot_dimension_numbers<[1], [0], [0], [1], [0, 0, 1, 1], [], []>} : vector<8x24xbf16>, vector<24x128xbf16>, vector<8x128xf32> -> vector<8x128xf32>
    %c40 = arith.constant 40 : index
    %c0_16 = arith.constant 0 : index
    %43 = vector.load %arg3[%c40, %c0_16] : memref<72x128xf32, #tpu.memory_space<vmem>>, vector<8x1xf32>
    %44 = vector.broadcast %43 : vector<8x1xf32> to vector<8x128xf32>
    %45 = arith.addf %42, %44 : vector<8x128xf32>
    %cst_17 = arith.constant 0.000000e+00 : f32
    %46 = vector.broadcast %cst_17 : f32 to vector<8x128xf32>
    %47 = arith.maximumf %45, %46 : vector<8x128xf32>
    %48 = arith.truncf %29 : vector<8x128xf32> to vector<8x128xbf16>
    %c536 = arith.constant 536 : index
    %c0_18 = arith.constant 0 : index
    %49 = vector.load %arg2[%c536, %c0_18] : memref<880x256xbf16, #tpu.memory_space<vmem>>, vector<128x64xbf16>
    %cst_19 = arith.constant dense<0.000000e+00> : vector<8x64xf32>
    %50 = tpu.matmul %48, %49, %cst_19 {dimension_numbers = #tpu.dot_dimension_numbers<[1], [0], [0], [1], [0, 0, 1, 1], [], []>} : vector<8x128xbf16>, vector<128x64xbf16>, vector<8x64xf32> -> vector<8x64xf32>
    %51 = arith.truncf %47 : vector<8x128xf32> to vector<8x128xbf16>
    %c664 = arith.constant 664 : index
    %c0_20 = arith.constant 0 : index
    %52 = vector.load %arg2[%c664, %c0_20] : memref<880x256xbf16, #tpu.memory_space<vmem>>, vector<128x192xbf16>
    %cst_21 = arith.constant dense<0.000000e+00> : vector<8x192xf32>
    %53 = tpu.matmul %51, %52, %cst_21 {dimension_numbers = #tpu.dot_dimension_numbers<[1], [0], [0], [1], [0, 0, 1, 1], [], []>} : vector<8x128xbf16>, vector<128x192xbf16>, vector<8x192xf32> -> vector<8x192xf32>
    %54 = vector.extract_strided_slice %53 {offsets = [0, 0], sizes = [8, 64], strides = [1, 1]} : vector<8x192xf32> to vector<8x64xf32>
    %55 = vector.extract_strided_slice %53 {offsets = [0, 64], sizes = [8, 64], strides = [1, 1]} : vector<8x192xf32> to vector<8x64xf32>
    %56 = arith.maximumf %54, %55 : vector<8x64xf32>
    %57 = vector.extract_strided_slice %53 {offsets = [0, 128], sizes = [8, 64], strides = [1, 1]} : vector<8x192xf32> to vector<8x64xf32>
    %58 = arith.maximumf %56, %57 : vector<8x64xf32>
    %59 = arith.addf %50, %58 : vector<8x64xf32>
    %c792 = arith.constant 792 : index
    %c0_22 = arith.constant 0 : index
    %60 = vector.load %arg2[%c792, %c0_22] : memref<880x256xbf16, #tpu.memory_space<vmem>>, vector<16x8xbf16>
    %61 = arith.truncf %59 : vector<8x64xf32> to vector<8x64xbf16>
    %cst_23 = arith.constant dense<0.000000e+00> : vector<16x64xf32>
    %62 = tpu.matmul %60, %61, %cst_23 {dimension_numbers = #tpu.dot_dimension_numbers<[1], [0], [0], [1], [0, 0, 1, 1], [], []>} : vector<16x8xbf16>, vector<8x64xbf16>, vector<16x64xf32> -> vector<16x64xf32>
    %c48 = arith.constant 48 : index
    %c0_24 = arith.constant 0 : index
    %63 = vector.load %arg3[%c48, %c0_24] : memref<72x128xf32, #tpu.memory_space<vmem>>, vector<16x1xf32>
    %64 = vector.broadcast %63 : vector<16x1xf32> to vector<16x64xf32>
    %65 = arith.addf %62, %64 : vector<16x64xf32>
    %66 = arith.truncf %65 : vector<16x64xf32> to vector<16x64xbf16>
    %c808 = arith.constant 808 : index
    %c0_25 = arith.constant 0 : index
    %67 = vector.load %arg2[%c808, %c0_25] : memref<880x256xbf16, #tpu.memory_space<vmem>>, vector<64x64xbf16>
    %cst_26 = arith.constant dense<0.000000e+00> : vector<16x64xf32>
    %68 = tpu.matmul %66, %67, %cst_26 {dimension_numbers = #tpu.dot_dimension_numbers<[1], [0], [0], [1], [0, 0, 1, 1], [], []>} : vector<16x64xbf16>, vector<64x64xbf16>, vector<16x64xf32> -> vector<16x64xf32>
    %69 = vector.extract_strided_slice %68 {offsets = [0, 0], sizes = [16, 16], strides = [1, 1]} : vector<16x64xf32> to vector<16x16xf32>
    %70 = vector.extract_strided_slice %68 {offsets = [0, 16], sizes = [16, 16], strides = [1, 1]} : vector<16x64xf32> to vector<16x16xf32>
    %71 = vector.extract_strided_slice %68 {offsets = [0, 32], sizes = [16, 16], strides = [1, 1]} : vector<16x64xf32> to vector<16x16xf32>
    %72 = vector.extract_strided_slice %68 {offsets = [0, 48], sizes = [16, 16], strides = [1, 1]} : vector<16x64xf32> to vector<16x16xf32>
    %73 = arith.maximumf %69, %70 : vector<16x16xf32>
    %74 = arith.maximumf %73, %71 : vector<16x16xf32>
    %75 = arith.maximumf %74, %72 : vector<16x16xf32>
    %cst_27 = arith.constant 0.000000e+00 : f32
    %76 = vector.broadcast %cst_27 : f32 to vector<16x16xf32>
    %77 = arith.cmpf oeq, %69, %75 : vector<16x16xf32>
    %cst_28 = arith.constant 5.000000e-01 : f32
    %78 = vector.broadcast %cst_28 : f32 to vector<16x16xf32>
    %79 = arith.cmpf olt, %76, %78 : vector<16x16xf32>
    %80 = arith.andi %77, %79 : vector<16x16xi1>
    %cst_29 = arith.constant -3.000000e+38 : f32
    %81 = vector.broadcast %cst_29 : f32 to vector<16x16xf32>
    %82 = arith.select %80, %81, %69 : vector<16x16xi1>, vector<16x16xf32>
    %cst_30 = arith.constant 1.000000e+00 : f32
    %cst_31 = arith.constant 0.000000e+00 : f32
    %83 = vector.broadcast %cst_30 : f32 to vector<16x16xf32>
    %84 = vector.broadcast %cst_31 : f32 to vector<16x16xf32>
    %85 = arith.select %80, %83, %84 : vector<16x16xi1>, vector<16x16xf32>
    %86 = arith.addf %76, %85 : vector<16x16xf32>
    %87 = arith.cmpf oeq, %70, %75 : vector<16x16xf32>
    %cst_32 = arith.constant 5.000000e-01 : f32
    %88 = vector.broadcast %cst_32 : f32 to vector<16x16xf32>
    %89 = arith.cmpf olt, %86, %88 : vector<16x16xf32>
    %90 = arith.andi %87, %89 : vector<16x16xi1>
    %cst_33 = arith.constant -3.000000e+38 : f32
    %91 = vector.broadcast %cst_33 : f32 to vector<16x16xf32>
    %92 = arith.select %90, %91, %70 : vector<16x16xi1>, vector<16x16xf32>
    %cst_34 = arith.constant 1.000000e+00 : f32
    %cst_35 = arith.constant 0.000000e+00 : f32
    %93 = vector.broadcast %cst_34 : f32 to vector<16x16xf32>
    %94 = vector.broadcast %cst_35 : f32 to vector<16x16xf32>
    %95 = arith.select %90, %93, %94 : vector<16x16xi1>, vector<16x16xf32>
    %96 = arith.addf %86, %95 : vector<16x16xf32>
    %97 = arith.cmpf oeq, %71, %75 : vector<16x16xf32>
    %cst_36 = arith.constant 5.000000e-01 : f32
    %98 = vector.broadcast %cst_36 : f32 to vector<16x16xf32>
    %99 = arith.cmpf olt, %96, %98 : vector<16x16xf32>
    %100 = arith.andi %97, %99 : vector<16x16xi1>
    %cst_37 = arith.constant -3.000000e+38 : f32
    %101 = vector.broadcast %cst_37 : f32 to vector<16x16xf32>
    %102 = arith.select %100, %101, %71 : vector<16x16xi1>, vector<16x16xf32>
    %cst_38 = arith.constant 1.000000e+00 : f32
    %cst_39 = arith.constant 0.000000e+00 : f32
    %103 = vector.broadcast %cst_38 : f32 to vector<16x16xf32>
    %104 = vector.broadcast %cst_39 : f32 to vector<16x16xf32>
    %105 = arith.select %100, %103, %104 : vector<16x16xi1>, vector<16x16xf32>
    %106 = arith.addf %96, %105 : vector<16x16xf32>
    %107 = arith.cmpf oeq, %72, %75 : vector<16x16xf32>
    %cst_40 = arith.constant 5.000000e-01 : f32
    %108 = vector.broadcast %cst_40 : f32 to vector<16x16xf32>
    %109 = arith.cmpf olt, %106, %108 : vector<16x16xf32>
    %110 = arith.andi %107, %109 : vector<16x16xi1>
    %cst_41 = arith.constant -3.000000e+38 : f32
    %111 = vector.broadcast %cst_41 : f32 to vector<16x16xf32>
    %112 = arith.select %110, %111, %72 : vector<16x16xi1>, vector<16x16xf32>
    %113 = arith.maximumf %82, %92 : vector<16x16xf32>
    %114 = arith.maximumf %113, %102 : vector<16x16xf32>
    %115 = arith.maximumf %114, %112 : vector<16x16xf32>
    %116 = tpu.concatenate %75, %115 in 0 : vector<16x16xf32>, vector<16x16xf32> -> vector<32x16xf32>
    %c872 = arith.constant 872 : index
    %c0_42 = arith.constant 0 : index
    %117 = vector.load %arg2[%c872, %c0_42] : memref<880x256xbf16, #tpu.memory_space<vmem>>, vector<2x32xbf16>
    %118 = arith.truncf %116 : vector<32x16xf32> to vector<32x16xbf16>
    %cst_43 = arith.constant dense<0.000000e+00> : vector<2x16xf32>
    %119 = tpu.matmul %117, %118, %cst_43 {dimension_numbers = #tpu.dot_dimension_numbers<[1], [0], [0], [1], [0, 0, 1, 1], [], []>} : vector<2x32xbf16>, vector<32x16xbf16>, vector<2x16xf32> -> vector<2x16xf32>
    %c64 = arith.constant 64 : index
    %c0_44 = arith.constant 0 : index
    %120 = vector.load %arg3[%c64, %c0_44] : memref<72x128xf32, #tpu.memory_space<vmem>>, vector<2x1xf32>
    %121 = vector.broadcast %120 : vector<2x1xf32> to vector<2x16xf32>
    %122 = arith.addf %119, %121 : vector<2x16xf32>
    %cst_45 = arith.constant dense<0xFF800000> : vector<16xf32>
    %123 = vector.multi_reduction <maximumf>, %122, %cst_45 [0] : vector<2x16xf32> to vector<16xf32>
    %124 = vector.shape_cast %123 : vector<16xf32> to vector<1x16xf32>
    %125 = vector.broadcast %124 : vector<1x16xf32> to vector<2x16xf32>
    %126 = arith.subf %122, %125 : vector<2x16xf32>
    %127 = math.exp %126 : vector<2x16xf32>
    %cst_46 = arith.constant dense<0.000000e+00> : vector<16xf32>
    %128 = vector.multi_reduction <add>, %127, %cst_46 [0] : vector<2x16xf32> to vector<16xf32>
    %129 = vector.shape_cast %128 : vector<16xf32> to vector<1x16xf32>
    %130 = tpu.reciprocal %129 {approx = true} : vector<1x16xf32> -> vector<1x16xf32>
    %131 = vector.broadcast %130 : vector<1x16xf32> to vector<2x16xf32>
    %132 = arith.mulf %127, %131 : vector<2x16xf32>
    %c0_47 = arith.constant 0 : index
    %c0_48 = arith.constant 0 : index
    %133 = vector.load %arg4[%c0_47, %c0_48] : memref<2x16xf32, #tpu.memory_space<vmem>>, vector<2x16xf32>
    tpu.vector_store %arg4[%c0_47, %c0_48], %132 {strides = array<i32>} : memref<2x16xf32, #tpu.memory_space<vmem>>, vector<2x16xf32>,
    return
  }
  func.func @transform_0(%arg0: i32) -> (i32, i32) {
    %c0_i32 = arith.constant 0 : i32
    %c0_i32_0 = arith.constant 0 : i32
    return %c0_i32, %arg0 : i32, i32
  }
  func.func @transform_1(%arg0: i32) -> (i32, i32) {
    %c0_i32 = arith.constant 0 : i32
    %c0_i32_0 = arith.constant 0 : i32
    %c0_i32_1 = arith.constant 0 : i32
    return %c0_i32, %c0_i32_0 : i32, i32
  }
  func.func @transform_2(%arg0: i32) -> (i32, i32) {
    %c0_i32 = arith.constant 0 : i32
    %c0_i32_0 = arith.constant 0 : i32
    %c0_i32_1 = arith.constant 0 : i32
    return %c0_i32, %c0_i32_0 : i32, i32
  }
  func.func @transform_3(%arg0: i32) -> (i32, i32) {
    %c0_i32 = arith.constant 0 : i32
    %c0_i32_0 = arith.constant 0 : i32
    return %c0_i32, %arg0 : i32, i32
  }
}

</mosaic_0001>

<bundles_post_ra>
// kernel: forward.1
= control target key start
LH: loop header
LB: loop body
LE: loop exit
PB: predicated region body
PF: predicated region fallthrough
CT: control target
= control target key end

     0   :  { %s2091_s0 = inlined_call_operand.vmem [shape: bf16[32,512], index: 0, kind: input, shape index: {}]   ;;  %s2092_s1 = inlined_call_operand.vmem [shape: bf16[880,256], index: 1, kind: input, shape index: {}]   ;;  %s2093_s2 = inlined_call_operand.vmem [shape: f32[72,128], index: 2, kind: input, shape index: {}]   ;;  %s2094_s3 = inlined_call_operand.hbm [shape: f32[2,16], index: 3, kind: output, shape index: {}]  }
   0x1   :  { %v1538_v0 = vld [vmem:[%s2092_s1 + $0x80] ss:$8 sps:$4 sm:$0xff]   ;;  %v1542_v4 = vld [vmem:[%s2092_s1 + $0x90] ss:$8 sps:$4 sm:$0xff]   ;;  %v1572_v33 = vld [vmem:[%s2091_s0 + $0x4] ss:$16 sps:$4 sm:$0xff]  }
   0x2   :  { %v1539_v1 = vld [vmem:[%s2092_s1 + $0x180] ss:$8 sps:$4 sm:$0xff]   ;;  %1343 = vmatprep.subr.bf16.mxu0 %v1538_v0  ;;  %v1543_v5 = vld [vmem:[%s2092_s1 + $0x190] ss:$8 sps:$4 sm:$0xff]   ;;  %v1575_v35 = vld [vmem:[%s2091_s0 + $0xc] ss:$16 sps:$4 sm:$0xff]   ;;  %357 = vmatprep.mubr.bf16.mxu0 %v1572_v33 }
   0x3   :  { %v1540_v2 = vld [vmem:[%s2092_s1] ss:$8 sps:$4 sm:$0xff]   ;;  %1371 = vmatprep.subr.bf16.mxu1 %v1539_v1  ;;  %v1544_v6 = vld [vmem:[%s2092_s1 + $0x10] ss:$8 sps:$4 sm:$0xff]   ;;  %v1576_v36 = vld [vmem:[%s2091_s0 + $0x24] ss:$16 sps:$4 sm:$0xff]   ;;  %406 = vmatprep.mubr.bf16.mxu1 %v1575_v35 }
   0x4   :  { %v1541_v3 = vld [vmem:[%s2092_s1 + $0x100] ss:$8 sps:$4 sm:$0xff]   ;;  %1344 = vmatpush3.bf16.msra.mxu0 %v1540_v2  ;;  %v1545_v7 = vld [vmem:[%s2092_s1 + $0x110] ss:$8 sps:$4 sm:$0xff]   ;;  %v1578_v37 = vld [vmem:[%s2091_s0 + $0x2c] ss:$16 sps:$4 sm:$0xff]  }
   0x5   :  { %1372 = vmatpush3.bf16.msra.mxu1 %v1541_v3  ;;  %1345 = vmatprep.subr.bf16.mxu0 %v1542_v4  ;;  %v1546_v8 = vld [vmem:[%s2092_s1 + $0xa0] ss:$8 sps:$4 sm:$0xff]   ;;  %v1550_v12 = vld [vmem:[%s2092_s1 + $0xb0] ss:$8 sps:$4 sm:$0xff]  }
   0x6   :  { %1373 = vmatprep.subr.bf16.mxu1 %v1543_v5  ;;  %v1547_v9 = vld [vmem:[%s2092_s1 + $0x1a0] ss:$8 sps:$4 sm:$0xff]   ;;  %v1551_v13 = vld [vmem:[%s2092_s1 + $0x1b0] ss:$8 sps:$4 sm:$0xff]  }
   0x7   :  { %v1548_v10 = vld [vmem:[%s2092_s1 + $0x20] ss:$8 sps:$4 sm:$0xff]   ;;  %v1552_v14 = vld [vmem:[%s2092_s1 + $0x30] ss:$8 sps:$4 sm:$0xff]  }
   0x8   :  { %1346 = vmatpush3.bf16.msra.mxu0 %v1544_v6  ;;  %v1549_v11 = vld [vmem:[%s2092_s1 + $0x120] ss:$8 sps:$4 sm:$0xff]   ;;  %v1553_v15 = vld [vmem:[%s2092_s1 + $0x130] ss:$8 sps:$4 sm:$0xff]  }
   0x9   :  { %1374 = vmatpush3.bf16.msra.mxu1 %v1545_v7  ;;  %1347 = vmatprep.subr.bf16.mxu0 %v1546_v8  ;;  %v1554_v16 = vld [vmem:[%s2092_s1 + $0xc0] ss:$8 sps:$4 sm:$0xff]   ;;  %v1558_v20 = vld [vmem:[%s2092_s1 + $0xd0] ss:$8 sps:$4 sm:$0xff]  }
   0xa   :  { %1375 = vmatprep.subr.bf16.mxu1 %v1547_v9  ;;  %v1555_v17 = vld [vmem:[%s2092_s1 + $0x1c0] ss:$8 sps:$4 sm:$0xff]   ;;  %v1559_v21 = vld [vmem:[%s2092_s1 + $0x1d0] ss:$8 sps:$4 sm:$0xff]  }
   0xb   :  { %v1556_v18 = vld [vmem:[%s2092_s1 + $0x40] ss:$8 sps:$4 sm:$0xff]   ;;  %v1560_v22 = vld [vmem:[%s2092_s1 + $0x50] ss:$8 sps:$4 sm:$0xff]  }
   0xc   :  { %1348 = vmatpush3.bf16.msra.mxu0 %v1548_v10  ;;  %v1557_v19 = vld [vmem:[%s2092_s1 + $0x140] ss:$8 sps:$4 sm:$0xff]   ;;  %v1561_v23 = vld [vmem:[%s2092_s1 + $0x150] ss:$8 sps:$4 sm:$0xff]  }
   0xd   :  { %1376 = vmatpush3.bf16.msra.mxu1 %v1549_v11  ;;  %1349 = vmatprep.subr.bf16.mxu0 %v1550_v12  ;;  %v1562_v24 = vld [vmem:[%s2092_s1 + $0xe0] ss:$8 sps:$4 sm:$0xff]   ;;  %v1566_v28 = vld [vmem:[%s2092_s1 + $0xf0] ss:$8 sps:$4 sm:$0xff]  }
   0xe   :  { %1377 = vmatprep.subr.bf16.mxu1 %v1551_v13  ;;  %v1563_v25 = vld [vmem:[%s2092_s1 + $0x1e0] ss:$8 sps:$4 sm:$0xff]   ;;  %v1567_v29 = vld [vmem:[%s2092_s1 + $0x1f0] ss:$8 sps:$4 sm:$0xff]  }
   0xf   :  { %v1564_v26 = vld [vmem:[%s2092_s1 + $0x60] ss:$8 sps:$4 sm:$0xff]   ;;  %v1568_v30 = vld [vmem:[%s2092_s1 + $0x70] ss:$8 sps:$4 sm:$0xff]  }
  0x10   :  { %1350 = vmatpush3.bf16.msra.mxu0 %v1552_v14  ;;  %v1565_v27 = vld [vmem:[%s2092_s1 + $0x160] ss:$8 sps:$4 sm:$0xff]   ;;  %v1569_v31 = vld [vmem:[%s2092_s1 + $0x170] ss:$8 sps:$4 sm:$0xff]  }
  0x11   :  { %1378 = vmatpush3.bf16.msra.mxu1 %v1553_v15  ;;  %1351 = vmatprep.subr.bf16.mxu0 %v1554_v16  ;;  %v1570_v32 = vld [vmem:[%s2091_s0] ss:$16 sps:$4 sm:$0xff]   ;;  %v1573_v34 = vld [vmem:[%s2091_s0 + $0x8] ss:$16 sps:$4 sm:$0xff]  }
  0x12   :  { %1379 = vmatprep.subr.bf16.mxu1 %v1555_v17  ;;  %v1580_v38 = vld [vmem:[%s2091_s0 + $0x20] ss:$16 sps:$4 sm:$0xff]   ;;  %v1581_v39 = vld [vmem:[%s2091_s0 + $0x28] ss:$16 sps:$4 sm:$0xff]  }
  0x14   :  { %1352 = vmatpush3.bf16.msra.mxu0 %v1556_v18 }
  0x15   :  { %1380 = vmatpush3.bf16.msra.mxu1 %v1557_v19  ;;  %1353 = vmatprep.subr.bf16.mxu0 %v1558_v20 }
  0x16   :  { %1381 = vmatprep.subr.bf16.mxu1 %v1559_v21 }
  0x18   :  { %1354 = vmatpush3.bf16.msra.mxu0 %v1560_v22 }
  0x19   :  { %1382 = vmatpush3.bf16.msra.mxu1 %v1561_v23  ;;  %1355 = vmatprep.subr.bf16.mxu0 %v1562_v24 }
  0x1a   :  { %1383 = vmatprep.subr.bf16.mxu1 %v1563_v25 }
  0x1c   :  { %1356 = vmatpush3.bf16.msra.mxu0 %v1564_v26 }
  0x1d   :  { %1384 = vmatpush3.bf16.msra.mxu1 %v1565_v27  ;;  %1357 = vmatprep.subr.bf16.mxu0 %v1566_v28 }
  0x1e   :  { %1385 = vmatprep.subr.bf16.mxu1 %v1567_v29 }
  0x20   :  { %1358 = vmatpush3.bf16.msra.mxu0 %v1568_v30 }
  0x21   :  { %1386 = vmatpush3.bf16.msra.mxu1 %v1569_v31 }
  0x23   :  { %358 = vmatmul.mubr.bf16.vlgmr.msra.gmra.mrb[0].mxu0 %v1570_v32 }
  0x24   :  { %407 = vmatmul.mubr.bf16.vlgmr.msra.gmra.mrb[0].mxu1 %v1573_v34  ;;  %365 = vmatprep.mubr.bf16.mxu0 %v1576_v36 }
  0x25   :  { %414 = vmatprep.mubr.bf16.mxu1 %v1578_v37 }
  0x2b   :  { %366 = vmatmul.mubr.bf16.gmra.mrb[4].mxu0 %v1580_v38 }
  0x2c   :  { %415 = vmatmul.mubr.bf16.gmra.mrb[4].mxu1 %v1581_v39 }
  0x2d   :  { %8 = vsyncpa [#allocation3], 0  ;;  %v1265_v42 = vld [vmem:[%s2093_s2] ss:$0 sm:$0xff]  ;;  %v1652_v56 = vmov 0.0   ;;  %s1653_s0 = smov 1  }
  0x2e   :  { %1428 = vmatprep.subr.bf16.mxu0 %v1652_v56  ;;  %1444 = vmatprep.subr.bf16.mxu1 %v1652_v56  ;;  %s1654_s13 = smov 127   ;;  %vm1655_vm0 = vmmov 0   ;;  %v491_v16 = vld [vmem:[%s2093_s2 + $0x18] sm:$0xff]  ;;  %v1656_v17 = vmov 0   ;;  %v568_v18 = vld [vmem:[%s2093_s2 + $0x28] sm:$0xff]  ;;  %vm445_vm1 = vcmask 7168  }
  0x2f   :  { %1440 = vmatprep.mubr.msk.bf16.mxu0 %vm1655_vm0, %v1652_v56  ;;  %1448 = vmatprep.mubr.msk.bf16.mxu1 %vm1655_vm0, %v1652_v56  ;;  %v1843_v20 = vld [vmem:[%s2093_s2 + $0x8] ss:$0 sm:$0xff]  ;;  %vm470_vm2 = vcmask 1039360   ;;  %v1859_v38 = vld [vmem:[%s2093_s2 + $0x10] ss:$0 sm:$0xff]  ;;  %vm508_vm3 = vcmask 785408  }
  0x30   :  { %1511 = vset.pattern.permute.xlu0 %v1656_v17  ;;  %1512 = vset.pattern.permute.xlu1 %v1656_v17  ;;  %vm578_vm4 = vcmask 1043456   ;;  %vm574_vm5 = vcmask 195584   ;;  %s1657_s22 = smov 64   ;;  %vm892_vm6 = vcmask 64512   ;;  %vm973_vm7 = vcmask 523264   ;;  %s1658_s8 = smov 112  }
  0x31   :  { %s1659_s9 = smov 96   ;;  %s1660_s10 = smov 80  }
  0x32   :  { %s1661_s11 = smov 16   ;;  %s1662_s12 = smov 32  }
  0xf6   :  { %v1359_v40 = vpop.f32.mrb[0].mxu0 }
  0xf7   :  { %v1387_v41 = vpop.f32.mrb[0].mxu1  ;;  %v1360_v43 = vpop.f32.mrb[1].mxu0 }
  0xf8   :  { %v1361_v44 = vadd.f32 %v1360_v43, %v1359_v40  ;;  %v1388_v45 = vpop.f32.mrb[1].mxu1  ;;  %v1362_v46 = vpop.f32.mrb[2].mxu0 }
  0xf9   :  { %v1389_v47 = vadd.f32 %v1388_v45, %v1387_v41  ;;  %v1390_v48 = vpop.f32.mrb[2].mxu1  ;;  %v1363_v49 = vpop.f32.mrb[3].mxu0 }
  0xfa   :  { %v360_v50 = vadd.f32 %v1361_v44, %v1265_v42  ;;  %v1364_v51 = vadd.f32 %v1363_v49, %v1362_v46  ;;  %v1391_v52 = vpop.f32.mrb[3].mxu1  ;;  %v1582_v49 = vld [vmem:[%s2092_s1 + $0x200] ss:$8 sps:$4 sm:$0xff]  }
  0xfb   :  { %v1392_v53 = vadd.f32 %v1391_v52, %v1390_v48  ;;  %v1585_v52 = vld [vmem:[%s2092_s1 + $0x238] ss:$8 sps:$4 sm:$0xff]  }
  0xfc   :  { %v409_v54 = vadd.f32 %v1389_v47, %v360_v50  ;;  %v363_v55 = vadd.f32 %v1364_v51, %v1265_v42  ;;  %v1583_v50 = vld [vmem:[%s2092_s1 + $0x218] ss:$8 sps:$4 sm:$0xff]   ;;  %v1584_v51 = vld [vmem:[%s2092_s1 + $0x228] ss:$8 sps:$4 sm:$0xff]  }
  0xfe   :  { %v1810_v57 = vmax.f32 %v409_v54, 0.0  ;;  %v412_v58 = vadd.f32 %v1392_v53, %v363_v55  ;;  %v1365_v59 = vpop.f32.mrb[4].mxu0  ;;  %v1586_v53 = vld [vmem:[%s2092_s1 + $0x248] ss:$8 sps:$4 sm:$0xff]  }
  0xff   :  { %v1393_v60 = vpop.f32.mrb[4].mxu1  ;;  %v1366_v61 = vpop.f32.mrb[5].mxu0 }
 0x100   :  { %v1812_v62 = vmax.f32 %v412_v58, 0.0  ;;  %v1367_v63 = vadd.f32 %v1366_v61, %v1365_v59  ;;  %v1394_v0 = vpop.f32.mrb[5].mxu1  ;;  %v1368_v1 = vpop.f32.mrb[6].mxu0  ;;  %433 = vrot.lane.b32.xlu0 %v1810_v57, %s1653_s0  ;;  %v1587_v59 = vld [vmem:[%s2092_s1 + $0x258] ss:$8 sps:$4 sm:$0xff]  }
 0x101   :  { %v1395_v2 = vadd.f32 %v1394_v0, %v1393_v60  ;;  %v1396_v3 = vpop.f32.mrb[6].mxu1  ;;  %v1369_v4 = vpop.f32.mrb[7].mxu0  ;;  %v1589_v0 = vld [vmem:[%s2092_s1 + $0x278] ss:$8 sps:$4 sm:$0xff]  }
 0x102   :  { %v368_v5 = vadd.f32 %v1367_v63, %v1265_v42  ;;  %v1370_v6 = vadd.f32 %v1369_v4, %v1368_v1  ;;  %v1397_v7 = vpop.f32.mrb[7].mxu1  ;;  %v485_v8 = vpack.c.bf16 %v1812_v62, %v1810_v57  ;;  %v1588_v63 = vld [vmem:[%s2092_s1 + $0x268] ss:$8 sps:$4 sm:$0xff]   ;;  %v492_v1 = vld [vmem:[%s2093_s2 + $0x20] sm:$0xff] }
 0x103   :  { %v1398_v9 = vadd.f32 %v1397_v7, %v1396_v3  ;;  %v875_v3 = vld [vmem:[%s2093_s2 + $0x30] sm:$0xff] }
 0x104   :  { %v417_v10 = vadd.f32 %v1395_v2, %v368_v5  ;;  %v371_v11 = vadd.f32 %v1370_v6, %v1265_v42  ;;  %435 = vrot.lane.b32.xlu0 %v1812_v62, %s1653_s0  ;;  %v1590_v2 = vld [vmem:[%s2092_s1 + $0x288] ss:$8 sps:$4 sm:$0xff]  }
 0x106   :  { %v425_v12 = vmax.f32 %v417_v10, 0.0  ;;  %v420_v13 = vadd.f32 %v1398_v9, %v371_v11 }
 0x108   :  { %v426_v14 = vmax.f32 %v420_v13, 0.0  ;;  %437 = vrot.lane.b32.xlu1 %v425_v12, %s1653_s0  ;;  %458 = vrot.lane.b32.xlu0 %v1810_v57, %s1654_s13 }
 0x10a   :  { %v486_v15 = vpack.c.bf16 %v426_v14, %v425_v12 }
 0x10c   :  { %439 = vrot.lane.b32.xlu1 %v426_v14, %s1653_s0  ;;  %462 = vrot.lane.b32.xlu0 %v425_v12, %s1654_s13  ;;  %v1593_v12 = vld [vmem:[%s2092_s1 + $0x29c] ss:$8 sps:$4 sm:$0xff]  }
 0x110   :  { %460 = vrot.lane.b32.xlu1 %v1812_v62, %s1654_s13  ;;  %495 = vperm.xlu0 %1511, %v491_v16   ;;  %v1596_v16 = vld [vmem:[%s2092_s1 + $0x2ac] ss:$8 sps:$4 sm:$0xff]  }
 0x114   :  { %464 = vrot.lane.b32.xlu1 %v426_v14, %s1654_s13  ;;  %571 = vperm.xlu0 %1511, %v568_v18   ;;  %v567_v14 = vld [vmem:[%s2092_s1 + $0x210] sm:$0xf] }
 0x115   :  { %v1594_v18 = vld [vmem:[%s2092_s1 + $0x2a8] ss:$8 sps:$4 sm:$0xff]  }
 0x172   :  { %v434_v19 = vpop.permute.xlu0 %433 }
 0x173   :  { %v446_v21 = vsel %vm445_vm1, 0.0, %v434_v19  ;;  %v1599_v19 = vld [vmem:[%s2092_s1 + $0x2bc] ss:$8 sps:$4 sm:$0xff]  }
 0x174   :  { %v454_v24 = vmul.f32 %v1843_v20, %v446_v21  ;;  %v1602_v21 = vld [vmem:[%s2092_s1 + $0x2cc] ss:$8 sps:$4 sm:$0xff]  }
 0x176   :  { %v436_v22 = vpop.permute.xlu0 %435 }
 0x177   :  { %v447_v23 = vsel %vm445_vm1, 0.0, %v436_v22 }
 0x178   :  { %v455_v25 = vmul.f32 %v1843_v20, %v447_v23 }
 0x17a   :  { %v483_v26 = vpack.c.bf16 %v455_v25, %v454_v24  ;;  %v438_v27 = vpop.permute.xlu1 %437  ;;  %v459_v35 = vpop.permute.xlu0 %458  ;;  %v1600_v24 = vld [vmem:[%s2092_s1 + $0x2c8] ss:$8 sps:$4 sm:$0xff]  }
 0x17b   :  { %v448_v28 = vsel %vm445_vm1, 0.0, %v438_v27  ;;  %v471_v39 = vsel %vm470_vm2, %v459_v35, 0.0  ;;  %v1603_v27 = vld [vmem:[%s2092_s1 + $0x2d8] ss:$8 sps:$4 sm:$0xff]  }
 0x17c   :  { %1429 = vmatpush3.bf16.msra.mxu0 %v483_v26  ;;  %v456_v31 = vmul.f32 %v1843_v20, %v448_v28  ;;  %v479_v43 = vmul.f32 %v1859_v38, %v471_v39  ;;  %v1605_v26 = vld [vmem:[%s2092_s1 + $0x2dc] ss:$8 sps:$4 sm:$0xff]   ;;  %v1608_v28 = vld [vmem:[%s2092_s1 + $0x2ec] ss:$8 sps:$4 sm:$0xff]  }
 0x17d   :  { %1430 = vmatprep.subr.bf16.mxu0 %v1652_v56 }
 0x17e   :  { %v440_v29 = vpop.permute.xlu1 %439  ;;  %v463_v40 = vpop.permute.xlu0 %462 }
 0x17f   :  { %v449_v30 = vsel %vm445_vm1, 0.0, %v440_v29  ;;  %v473_v44 = vsel %vm470_vm2, %v463_v40, 0.0  ;;  %v1606_v29 = vld [vmem:[%s2092_s1 + $0x2e8] ss:$8 sps:$4 sm:$0xff]  }
 0x180   :  { %v457_v32 = vmul.f32 %v1843_v20, %v449_v30  ;;  %v481_v47 = vmul.f32 %v1859_v38, %v473_v44  ;;  %v1611_v30 = vld [vmem:[%s2092_s1 + $0x2fc] ss:$8 sps:$4 sm:$0xff]  }
 0x182   :  { %v484_v33 = vpack.c.bf16 %v457_v32, %v456_v31  ;;  %v461_v34 = vpop.permute.xlu1 %460  ;;  %v1609_v31 = vld [vmem:[%s2092_s1 + $0x2f8] ss:$8 sps:$4 sm:$0xff]   ;;  %v1614_v32 = vld [vmem:[%s2092_s1 + $0x30c] ss:$8 sps:$4 sm:$0xff]  }
 0x183   :  { %v472_v36 = vsel %vm470_vm2, %v461_v34, 0.0 }
 0x184   :  { %1431 = vmatpush3.bf16.msra.mxu0 %v484_v33  ;;  %v480_v41 = vmul.f32 %v1859_v38, %v472_v36  ;;  %v1612_v33 = vld [vmem:[%s2092_s1 + $0x308] ss:$8 sps:$4 sm:$0xff]  }
 0x185   :  { %1432 = vmatprep.subr.bf16.mxu0 %v1652_v56 }
 0x186   :  { %v465_v37 = vpop.permute.xlu1 %464  ;;  %v487_v45 = vpack.c.bf16 %v480_v41, %v479_v43 }
 0x187   :  { %v474_v42 = vsel %vm470_vm2, %v465_v37, 0.0 }
 0x188   :  { %1433 = vmatpush3.bf16.msra.mxu0 %v485_v8  ;;  %v482_v46 = vmul.f32 %v1859_v38, %v474_v42 }
 0x189   :  { %1434 = vmatprep.subr.bf16.mxu0 %v1652_v56 }
 0x18a   :  { %v488_v48 = vpack.c.bf16 %v482_v46, %v481_v47 }
 0x18c   :  { %1435 = vmatpush3.bf16.msra.mxu0 %v486_v15  ;;  %v1591_v15 = vld [vmem:[%s2092_s1 + $0x298] ss:$8 sps:$4 sm:$0xff]  }
 0x18d   :  { %1436 = vmatprep.subr.bf16.mxu0 %v1652_v56 }
 0x18f   :  { %v496_v54 = vpop.permute.xlu0 %495 }
 0x190   :  { %1437 = vmatpush3.bf16.msra.mxu0 %v487_v45 }
 0x191   :  { %1438 = vmatprep.subr.bf16.mxu0 %v1652_v56 }
 0x193   :  { %v572_v34 = vpop.permute.xlu0 %571 }
 0x194   :  { %1439 = vmatpush3.bf16.msra.mxu0 %v488_v48 }
 0x195   :  { %1452 = vmatprep.subr.bf16.mxu0 %v1652_v56 }
 0x197   :  { %1441 = vmatmul.mubr.msk.bf16.vlgmr.msra.gmra.mrb[8].mxu0 %vm508_vm3, %v1582_v49  ;;  %v876_v49 = vld [vmem:[%s2093_s2 + $0x38] sm:$0xff] }
 0x198   :  { %1468 = vmatprep.mubr.msk.bf16.mxu0 %vm1655_vm0, %v1652_v56  ;;  %1453 = vmatpush3.bf16.msra.mxu0 %v1583_v50 }
 0x199   :  { %1454 = vmatprep.subr.bf16.mxu0 %v1652_v56 }
 0x19c   :  { %1455 = vmatpush3.bf16.msra.mxu0 %v1584_v51  ;;  %v1616_v51 = vld [vmem:[%s2092_s1 + $0x328] ss:$8 sps:$4 sm:$0xff]  }
 0x19d   :  { %1456 = vmatprep.subr.bf16.mxu0 %v1652_v56 }
 0x1a0   :  { %1457 = vmatpush3.bf16.msra.mxu0 %v1585_v52  ;;  %v1617_v52 = vld [vmem:[%s2092_s1 + $0x338] ss:$8 sps:$4 sm:$0xff]  }
 0x1a1   :  { %1458 = vmatprep.subr.bf16.mxu0 %v1652_v56 }
 0x1a4   :  { %1459 = vmatpush3.bf16.msra.mxu0 %v1586_v53 }
 0x1a5   :  { %1460 = vmatprep.subr.bf16.mxu0 %v1652_v56 }
 0x1a8   :  { %1461 = vmatpush3.bf16.msra.mxu0 %v1587_v59 }
 0x1a9   :  { %1462 = vmatprep.subr.bf16.mxu0 %v1652_v56 }
 0x1ac   :  { %1463 = vmatpush3.bf16.msra.mxu0 %v1588_v63 }
 0x1ad   :  { %1464 = vmatprep.subr.bf16.mxu0 %v1652_v56 }
 0x1b0   :  { %1465 = vmatpush3.bf16.msra.mxu0 %v1589_v0 }
 0x1b1   :  { %1466 = vmatprep.subr.bf16.mxu0 %v1652_v56 }
 0x1b4   :  { %1467 = vmatpush3.bf16.msra.mxu0 %v1590_v2 }
 0x1b5   :  { %1478 = vmatprep.subr.bf16.mxu0 %v1652_v56 }
 0x26a   :  { %v546_v55 = vpop.f32.mrb[8].mxu0 }
 0x26b   :  { %v547_v57 = vadd.f32 %v546_v55, %v496_v54  ;;  %v1442_v58 = vpop.f32.mrb[9].mxu0 }
 0x26c   :  { %v549_v60 = vpop.f32.mrb[10].mxu0 }
 0x26d   :  { %v553_v61 = vmax.f32 %v547_v57, 0.0  ;;  %v1443_v62 = vpop.f32.mrb[11].mxu0 }
 0x26e   :  { %v1619_v62 = vld [vmem:[%s2092_s1 + $0x358] ss:$8 sps:$4 sm:$0xff]  }
 0x26f   :  { %555 = vrot.lane.b32.xlu1 %v553_v61, %s1653_s0  ;;  %s1663_s0 = smov 48  }
 0x273   :  { %560 = vrot.lane.b32.xlu1 %v553_v61, %s1654_s13 }
 0x277   :  { %500 = vperm.xlu1 %1512, %v492_v1  }
 0x27b   :  { %879 = vperm.xlu1 %1512, %v875_v3  }
 0x2e1   :  { %v556_v4 = vpop.permute.xlu1 %555 }
 0x2e2   :  { %v558_v5 = vsel %vm445_vm1, 0.0, %v556_v4 }
 0x2e3   :  { %v559_v6 = vmul.f32 %v1843_v20, %v558_v5  ;;  %v1597_v20 = vld [vmem:[%s2092_s1 + $0x2b8] ss:$8 sps:$4 sm:$0xff]  }
 0x2e5   :  { %v565_v7 = vpack.c.bf16 %v553_v61, %v559_v6  ;;  %v561_v8 = vpop.permute.xlu1 %560  ;;  %v1618_v61 = vld [vmem:[%s2092_s1 + $0x348] ss:$8 sps:$4 sm:$0xff]  }
 0x2e6   :  { %v563_v9 = vsel %vm470_vm2, %v561_v8, 0.0 }
 0x2e7   :  { %v564_v10 = vmul.f32 %v1859_v38, %v563_v9  ;;  %1445 = vmatpush3.bf16.msra.mxu1 %v565_v7 }
 0x2e8   :  { %1446 = vmatprep.subr.bf16.mxu1 %v1652_v56 }
 0x2e9   :  { %v566_v11 = vpack.c.bf16 %v564_v10, %v564_v10 }
 0x2eb   :  { %v580_v13 = vsel %vm578_vm4, %v566_v11, 0 }
 0x2ec   :  { %1447 = vmatpush3.bf16.msra.mxu1 %v580_v13 }
 0x2ed   :  { %737 = vmatprep.subr.bf16.mxu1 %v1593_v12 }
 0x2ef   :  { %1449 = vmatmul.mubr.msk.bf16.vlgmr.msra.gmra.mrb[8].mxu1 %vm574_vm5, %v567_v14 }
 0x2f0   :  { %738 = vmatpush1.bf16.msra.mxu1 %v1591_v15  ;;  %769 = vmatprep.mubr.bf16.mxu1 %v1656_v17 }
 0x2f1   :  { %739 = vmatprep.subr.bf16.mxu1 %v1596_v16 }
 0x2f4   :  { %740 = vmatpush1.bf16.msra.mxu1 %v1594_v18 }
 0x2f5   :  { %741 = vmatprep.subr.bf16.mxu1 %v1599_v19 }
 0x2f6   :  { %v501_v22 = vpop.permute.xlu1 %500 }
 0x2f7   :  { %v550_v23 = vadd.f32 %v549_v60, %v501_v22  ;;  %v1615_v60 = vld [vmem:[%s2092_s1 + $0x318] ss:$8 sps:$4 sm:$0xff]  }
 0x2f8   :  { %742 = vmatpush1.bf16.msra.mxu1 %v1597_v20 }
 0x2f9   :  { %v623_v25 = vpack.c.bf16 %v550_v23, %v550_v23  ;;  %743 = vmatprep.subr.bf16.mxu1 %v1602_v21 }
 0x2fa   :  { %v880_v0 = vpop.permute.xlu1 %879 }
 0x2fb   :  { %1469 = vmatmul.mubr.bf16.vlgmr.msra.gmra.mrb[12].mxu0 %v623_v25 }
 0x2fc   :  { %744 = vmatpush1.bf16.msra.mxu1 %v1600_v24  ;;  %1486 = vmatprep.mubr.msk.bf16.mxu0 %vm1655_vm0, %v1652_v56 }
 0x2fd   :  { %745 = vmatprep.subr.bf16.mxu1 %v1605_v26  ;;  %1479 = vmatpush3.bf16.msra.mxu0 %v1616_v51 }
 0x2fe   :  { %1480 = vmatprep.subr.bf16.mxu0 %v1652_v56 }
 0x300   :  { %746 = vmatpush1.bf16.msra.mxu1 %v1603_v27 }
 0x301   :  { %747 = vmatprep.subr.bf16.mxu1 %v1608_v28  ;;  %1481 = vmatpush3.bf16.msra.mxu0 %v1617_v52 }
 0x302   :  { %1482 = vmatprep.subr.bf16.mxu0 %v1652_v56 }
 0x304   :  { %748 = vmatpush1.bf16.msra.mxu1 %v1606_v29 }
 0x305   :  { %749 = vmatprep.subr.bf16.mxu1 %v1611_v30  ;;  %1483 = vmatpush3.bf16.msra.mxu0 %v1618_v61 }
 0x306   :  { %1484 = vmatprep.subr.bf16.mxu0 %v1652_v56 }
 0x308   :  { %750 = vmatpush1.bf16.msra.mxu1 %v1609_v31 }
 0x309   :  { %751 = vmatprep.subr.bf16.mxu1 %v1614_v32  ;;  %1485 = vmatpush3.bf16.msra.mxu0 %v1619_v62 }
 0x30c   :  { %752 = vmatpush1.bf16.msra.mxu1 %v1612_v33 }
 0x30d   :  { %1472 = vmatprep.subr.bf16.mxu1 %v1652_v56 }
 0x3c2   :  { %v616_v35 = vpop.f32.mrb[8].mxu1 }
 0x3c3   :  { %v617_v36 = vadd.f32 %v616_v35, %v572_v34  ;;  %v1450_v37 = vpop.f32.mrb[9].mxu1 }
 0x3c4   :  { %v619_v38 = vpop.f32.mrb[10].mxu1 }
 0x3c5   :  { %v622_v39 = vmax.f32 %v617_v36, 0.0  ;;  %v1451_v40 = vpop.f32.mrb[11].mxu1 }
 0x3c7   :  { %v640_v41 = vpack.c.bf16 %v622_v39, %v622_v39 }
 0x3c9   :  { %770 = vmatmul.mubr.bf16.vlgmr.msra.gmra.mrb[12].mxu1 %v640_v41 }
 0x3ca   :  { %1474 = vmatprep.mubr.msk.bf16.mxu1 %vm1655_vm0, %v1652_v56 }
 0x3ce   :  { %v866_v42 = vpop.f32.mrb[12].mxu0 }
 0x3cf   :  { %v1470_v43 = vpop.f32.mrb[13].mxu0 }
 0x3d0   :  { %v869_v44 = vpop.f32.mrb[14].mxu0 }
 0x3d1   :  { %v1471_v45 = vpop.f32.mrb[15].mxu0 }
 0x49c   :  { %v771_v46 = vpop.f32.mrb[12].mxu1 }
 0x49d   :  { %779 = vrot.lane.b32.xlu0 %v771_v46, %s1657_s22  ;;  %v773_v47 = vpop.f32.mrb[13].mxu1 }
 0x49e   :  { %v775_v48 = vpop.f32.mrb[14].mxu1 }
 0x49f   :  { %v776_v50 = vpop.f32.mrb[15].mxu1 }
 0x4a1   :  { %884 = vperm.xlu0 %1511, %v876_v49  }
 0x50f   :  { %v780_v53 = vpop.permute.xlu0 %779 }
 0x510   :  { %v782_v54 = vmax.f32 %v771_v46, %v780_v53 }
 0x512   :  { %v783_v55 = vmax.f32 %v782_v54, %v773_v47 }
 0x514   :  { %v867_v57 = vadd.f32 %v866_v42, %v783_v55 }
 0x516   :  { %v874_v58 = vpack.c.bf16 %v867_v57, %v867_v57 }
 0x518   :  { %v897_v59 = vsel %vm578_vm4, %v874_v58, 0 }
 0x519   :  { %1473 = vmatpush3.bf16.msra.mxu1 %v897_v59 }
 0x51a   :  { %1490 = vmatprep.subr.bf16.mxu1 %v1652_v56 }
 0x51c   :  { %1475 = vmatmul.mubr.msk.bf16.vlgmr.msra.gmra.mrb[16].mxu1 %vm892_vm6, %v1615_v60 }
 0x51d   :  { %1494 = vmatprep.mubr.msk.bf16.mxu1 %vm1655_vm0, %v1652_v56 }
 0x520   :  { %v885_v2 = vpop.permute.xlu0 %884 }
 0x5ef   :  { %v933_v63 = vpop.f32.mrb[16].mxu1 }
 0x5f0   :  { %v1476_v1 = vpop.f32.mrb[17].mxu1  ;;  %v934_v4 = vadd.f32 %v933_v63, %v880_v0 }
 0x5f1   :  { %v936_v3 = vpop.f32.mrb[18].mxu1 }
 0x5f2   :  { %v937_v5 = vadd.f32 %v936_v3, %v885_v2  ;;  %v1477_v6 = vpop.f32.mrb[19].mxu1 }
 0x5f4   :  { %v940_v7 = vpack.c.bf16 %v937_v5, %v934_v4 }
 0x5f6   :  { %1487 = vmatmul.mubr.msk.bf16.vlgmr.msra.gmra.mrb[16].mxu0 %vm973_vm7, %v940_v7 }
 0x6c9   :  { %v2005_v8 = vpop.f32.mrb[16].mxu0 }
 0x6ca   :  { %1020 = vrot.lane.b32.xlu1 %v2005_v8, %s1658_s8  ;;  %v1488_v9 = vpop.f32.mrb[17].mxu0 }
 0x6cb   :  { %v2009_v10 = vpop.f32.mrb[18].mxu0 }
 0x6cc   :  { %1022 = vrot.lane.b32.xlu0 %v2009_v10, %s1658_s8  ;;  %v1489_v11 = vpop.f32.mrb[19].mxu0 }
 0x6ce   :  { %1028 = vrot.lane.b32.xlu1 %v2005_v8, %s1659_s9 }
 0x6d0   :  { %1030 = vrot.lane.b32.xlu0 %v2009_v10, %s1659_s9 }
 0x6d2   :  { %1036 = vrot.lane.b32.xlu1 %v2005_v8, %s1660_s10 }
 0x6d4   :  { %1038 = vrot.lane.b32.xlu0 %v2009_v10, %s1660_s10 }
 0x73c   :  { %v1021_v12 = vpop.permute.xlu1 %1020 }
 0x73d   :  { %v1026_v15 = vmax.f32 %v2005_v8, %v1021_v12 }
 0x73e   :  { %v1023_v13 = vpop.permute.xlu0 %1022 }
 0x73f   :  { %v1027_v18 = vmax.f32 %v2009_v10, %v1023_v13 }
 0x740   :  { %v1029_v14 = vpop.permute.xlu1 %1028 }
 0x741   :  { %v1034_v19 = vmax.f32 %v1026_v15, %v1029_v14 }
 0x742   :  { %v1031_v16 = vpop.permute.xlu0 %1030 }
 0x743   :  { %v1035_v21 = vmax.f32 %v1027_v18, %v1031_v16 }
 0x744   :  { %v1037_v20 = vpop.permute.xlu1 %1036 }
 0x745   :  { %v1042_v22 = vmax.f32 %v1034_v19, %v1037_v20 }
 0x746   :  { %v1039_v23 = vpop.permute.xlu0 %1038 }
 0x747   :  { %v2023_v24 = vmax.f32 %v1035_v21, %v1039_v23  ;;  %1057 = vrot.lane.b32.xlu1 %v1042_v22, %s1661_s11  ;;  %vm1044_vm8 = vcmp.eq.f32.partialorder %v2005_v8, %v1042_v22 }
 0x748   :  { %v1051_v25 = vsel %vm1044_vm8, 1.0, %v1652_v56  ;;  %v2028_v26 = vsel %vm1044_vm8, -3e+38, %v2005_v8 }
 0x749   :  { %1059 = vrot.lane.b32.xlu0 %v2023_v24, %s1661_s11  ;;  %vm1065_vm9 = vcmp.lt.f32.partialorder %v1051_v25, 0.5  ;;  %v1178_v27 = vpack.c.bf16 %v2023_v24, %v1042_v22  ;;  %vm1045_vm10 = vcmp.eq.f32.partialorder %v2009_v10, %v2023_v24 }
 0x74a   :  { %v1067_v28 = vsel %vm1065_vm9, 1, %v1656_v17  ;;  %v1052_v29 = vsel %vm1045_vm10, 1.0, %v1652_v56  ;;  %v2037_v30 = vsel %vm1045_vm10, -3e+38, %v2009_v10 }
 0x74b   :  { %1069 = vrot.lane.b32.xlu1 %v1067_v28, %s1661_s11  ;;  %1491 = vmatpush3.bf16.msra.mxu1 %v1178_v27  ;;  %vm1066_vm11 = vcmp.lt.f32.partialorder %v1052_v29, 0.5 }
 0x74c   :  { %v1068_v31 = vsel %vm1066_vm11, 1, %v1656_v17  ;;  %1492 = vmatprep.subr.bf16.mxu1 %v1652_v56 }
 0x74d   :  { %1071 = vrot.lane.b32.xlu0 %v1068_v31, %s1661_s11 }
 0x751   :  { %1091 = vrot.lane.b32.xlu0 %v1042_v22, %s1662_s12 }
 0x7b9   :  { %v1058_v32 = vpop.permute.xlu1 %1057 }
 0x7ba   :  { %vm1063_vm12 = vcmp.eq.f32.partialorder %v2005_v8, %v1058_v32 }
 0x7bb   :  { %v1060_v33 = vpop.permute.xlu0 %1059 }
 0x7bc   :  { %vm1064_vm15 = vcmp.eq.f32.partialorder %v2009_v10, %v1060_v33 }
 0x7bd   :  { %v1070_v34 = vpop.permute.xlu1 %1069 }
 0x7be   :  { %vm1073_vm13 = vcmp.ne.s32.totalorder %v1070_v34, 0 }
 0x7bf   :  { %vm1075_vm14 = vmand %vm1063_vm12, %vm1073_vm13  ;;  %v1072_v35 = vpop.permute.xlu0 %1071 }
 0x7c0   :  { %v1077_v36 = vsel %vm1075_vm14, -3e+38, %v2005_v8  ;;  %vm1074_vm0 = vcmp.ne.s32.totalorder %v1072_v35, 0  ;;  %v1079_v37 = vsel %vm1075_vm14, 1.0, %v1652_v56 }
 0x7c1   :  { %vm1076_vm1 = vmand %vm1064_vm15, %vm1074_vm0 }
 0x7c2   :  { %v1080_v38 = vsel %vm1076_vm1, 1.0, %v1652_v56  ;;  %v1078_v39 = vsel %vm1076_vm1, -3e+38, %v2009_v10 }
 0x7c3   :  { %v1513_v40 = vpack.i.bf16 %v1080_v38, %v1079_v37  ;;  %v1523_v41 = vpack.i.bf16 %v1078_v39, %v1077_v36  ;;  %v1092_v47 = vpop.permute.xlu0 %1091 }
 0x7c4   :  { %vm1097_vm7 = vcmp.eq.f32.partialorder %v2005_v8, %v1092_v47 }
 0x7c5   :  { %1514 = vrot.lane.b32.xlu1 %v1513_v40, %s1658_s8 }
 0x7c9   :  { %1093 = vrot.lane.b32.xlu1 %v2023_v24, %s1662_s12 }
 0x837   :  { %v1515_v42 = vpop.permute.xlu1 %1514 }
 0x838   :  { %v1624_v43 = vadd.high.f32.bf16 %v1052_v29, %v1515_v42  ;;  %v1625_v44 = vadd.low.f32.bf16 %v1051_v25, %v1515_v42 }
 0x83a   :  { %vm1100_vm2 = vcmp.lt.f32.partialorder %v1624_v43, 0.5  ;;  %vm1099_vm3 = vcmp.lt.f32.partialorder %v1625_v44, 0.5 }
 0x83b   :  { %v1102_v45 = vsel %vm1100_vm2, 1, %v1656_v17  ;;  %v1101_v46 = vsel %vm1099_vm3, 1, %v1656_v17  ;;  %v1094_v48 = vpop.permute.xlu1 %1093  ;;  %vm1186_vm2 = vcmask 261120   ;;  %vm1230_vm3 = vcmask 123904  }
 0x83c   :  { %1105 = vrot.lane.b32.xlu1 %v1102_v45, %s1662_s12  ;;  %1103 = vrot.lane.b32.xlu0 %v1101_v46, %s1662_s12  ;;  %vm1098_vm4 = vcmp.eq.f32.partialorder %v2009_v10, %v1094_v48 }
 0x840   :  { %1125 = vrot.lane.b32.xlu1 %v1042_v22, %s1663_s0  ;;  %v1177_v22 = vld [vmem:[%s2092_s1 + $0x368] sm:$0x1]  ;;  %s1664_s1 = smov [#allocation2]  }
 0x841   :  { %s1257_s13 = sshll.u32 %s1664_s1, 4  ;;  %s1258_s13 = int_to_ptr.vmem [resolvable:$true] %s1257_s13 }
 0x842   :  { %s1628_s17 = scalar_lea.vmem %s1258_s13, 32  ;;  %p1633_p1 = scmp.lt.s32.totalorder %s1258_s13, %s1258_s13 }
 0x843   :  { %p1629_p0 = scmp.ne.s32.totalorder %s1258_s13, %s1628_s17  ;;  %p1634_p2 = scmp.lt.s32.totalorder %s1628_s17, %s1628_s17 }
 0x845   :  { %p1635_p3 = por %p1634_p2, %p1633_p1 }
 0x847   :  { %p1636_p4 = pnand %p1635_p3, %p1629_p0 }
 0x8ae   :  { %v1106_v49 = vpop.permute.xlu1 %1105  ;;  %v1104_v50 = vpop.permute.xlu0 %1103 }
 0x8af   :  { %vm1108_vm5 = vcmp.ne.s32.totalorder %v1106_v49, 0  ;;  %vm1107_vm6 = vcmp.ne.s32.totalorder %v1104_v50, 0 }
 0x8b0   :  { %vm1110_vm8 = vmand %vm1098_vm4, %vm1108_vm5 }
 0x8b1   :  { %v1112_v51 = vsel %vm1110_vm8, -3e+38, %v2009_v10  ;;  %v1114_v52 = vsel %vm1110_vm8, 1.0, %v1652_v56  ;;  %vm1109_vm9 = vmand %vm1097_vm7, %vm1107_vm6 }
 0x8b2   :  { %v1113_v53 = vsel %vm1109_vm9, 1.0, %v1652_v56  ;;  %v1111_v54 = vsel %vm1109_vm9, -3e+38, %v2005_v8  ;;  %v1180_v56 = vld [vmem:[%s2093_s2 + $0x40] sm:$0x3]  ;;  %v1126_v63 = vpop.permute.xlu1 %1125 }
 0x8b3   :  { %v1518_v55 = vpack.i.bf16 %v1114_v52, %v1113_v53  ;;  %v1528_v57 = vpack.i.bf16 %v1112_v51, %v1111_v54  ;;  %vm1131_vm15 = vcmp.eq.f32.partialorder %v2005_v8, %v1126_v63 }
 0x8b5   :  { %1519 = vrot.lane.b32.xlu0 %v1518_v55, %s1659_s9 }
 0x8b9   :  { %1127 = vrot.lane.b32.xlu0 %v2023_v24, %s1663_s0 }
 0x927   :  { %v1520_v58 = vpop.permute.xlu0 %1519 }
 0x928   :  { %v1626_v59 = vadd.high.f32.bf16 %v1624_v43, %v1520_v58  ;;  %v1627_v60 = vadd.low.f32.bf16 %v1625_v44, %v1520_v58 }
 0x92a   :  { %vm1134_vm10 = vcmp.lt.f32.partialorder %v1626_v59, 0.5  ;;  %vm1133_vm11 = vcmp.lt.f32.partialorder %v1627_v60, 0.5 }
 0x92b   :  { %v1136_v61 = vsel %vm1134_vm10, 1, %v1656_v17  ;;  %v1135_v62 = vsel %vm1133_vm11, 1, %v1656_v17  ;;  %v1128_v0 = vpop.permute.xlu0 %1127 }
 0x92c   :  { %1139 = vrot.lane.b32.xlu0 %v1136_v61, %s1663_s0  ;;  %1137 = vrot.lane.b32.xlu1 %v1135_v62, %s1663_s0  ;;  %vm1132_vm12 = vcmp.eq.f32.partialorder %v2009_v10, %v1128_v0 }
 0x930   :  { %1524 = vrot.lane.b32.xlu1 %v1523_v41, %s1658_s8  ;;  %1529 = vrot.lane.b32.xlu0 %v1528_v57, %s1659_s9 }
 0x934   :  { %1183 = vperm.xlu0 %1511, %v1180_v56  }
 0x99e   :  { %v1140_v1 = vpop.permute.xlu0 %1139  ;;  %v1138_v2 = vpop.permute.xlu1 %1137 }
 0x99f   :  { %vm1142_vm13 = vcmp.ne.s32.totalorder %v1140_v1, 0  ;;  %vm1141_vm14 = vcmp.ne.s32.totalorder %v1138_v2, 0 }
 0x9a0   :  { %vm1144_vm0 = vmand %vm1132_vm12, %vm1142_vm13 }
 0x9a1   :  { %v1146_v17 = vsel %vm1144_vm0, -3e+38, %v2009_v10  ;;  %vm1143_vm1 = vmand %vm1131_vm15, %vm1141_vm14 }
 0x9a2   :  { %v1145_v3 = vsel %vm1143_vm1, -3e+38, %v2005_v8  ;;  %v1525_v5 = vpop.permute.xlu1 %1524  ;;  %v1530_v9 = vpop.permute.xlu0 %1529 }
 0x9a3   :  { %v1533_v4 = vpack.i.bf16 %v1146_v17, %v1145_v3  ;;  %v1527_v6 = vunpack.i.h.bf16 %v1525_v5  ;;  %v1526_v7 = vunpack.i.l.bf16 %v1525_v5  ;;  %v1532_v13 = vunpack.i.h.bf16 %v1530_v9 }
 0x9a4   :  { %v1531_v14 = vunpack.i.l.bf16 %v1530_v9 }
 0x9a5   :  { %1534 = vrot.lane.b32.xlu1 %v1533_v4, %s1660_s10  ;;  %v1155_v11 = vmax.f32 %v2028_v26, %v1526_v7  ;;  %v1156_v12 = vmax.f32 %v2037_v30, %v1527_v6 }
 0x9a7   :  { %v1165_v16 = vmax.f32 %v1155_v11, %v1531_v14  ;;  %v1166_v18 = vmax.f32 %v1156_v12, %v1532_v13 }
 0x9b3   :  { %v1184_v23 = vpop.permute.xlu0 %1183 }
 0xa17   :  { %v1535_v15 = vpop.permute.xlu1 %1534 }
 0xa18   :  { %v1537_v10 = vunpack.i.h.bf16 %v1535_v15  ;;  %v1536_v19 = vunpack.i.l.bf16 %v1535_v15 }
 0xa1a   :  { %v1175_v20 = vmax.f32 %v1165_v16, %v1536_v19  ;;  %v1176_v8 = vmax.f32 %v1166_v18, %v1537_v10 }
 0xa1c   :  { %v1179_v21 = vpack.c.bf16 %v1176_v8, %v1175_v20 }
 0xa1e   :  { %1493 = vmatpush3.bf16.msra.mxu1 %v1179_v21 }
 0xa21   :  { %1495 = vmatmul.mubr.msk.bf16.vlgmr.msra.gmra.mrb[20].mxu1 %vm1186_vm2, %v1177_v22 }
 0xaf4   :  { %v1224_v24 = vpop.f32.mrb[20].mxu1 }
 0xaf5   :  { %v1225_v25 = vadd.f32 %v1224_v24, %v1184_v23  ;;  %v1496_v26 = vpop.f32.mrb[21].mxu1 }
 0xaf6   :  { %v1227_v27 = vpop.f32.mrb[22].mxu1 }
 0xaf7   :  { %v1231_v28 = vsel %vm1230_vm3, %v1225_v25, -inf  ;;  %v1497_v29 = vpop.f32.mrb[23].mxu1 }
 0xaf8   :  { %v1232_v30 = vrot.slane %v1231_v28, 4 }
 0xafa   :  { %v1233_v31 = vmax.f32 %v1231_v28, %v1232_v30 }
 0xafc   :  { %v1234_v32 = vrot.slane %v1233_v31, 2 }
 0xafe   :  { %v1235_v33 = vmax.f32 %v1233_v31, %v1234_v32 }
 0xb00   :  { %v1236_v34 = vrot.slane %v1235_v33, 1 }
 0xb02   :  { %v1237_v35 = vmax.f32 %v1235_v33, %v1236_v34 }
 0xb04   :  { %v1238_v36 = vsub.f32 %v1225_v25, %v1237_v35 }
 0xb06   :  { %v1239_v37 = vmul.f32 1.442695, %v1238_v36 }
 0xb08   :  { %1620 = vpow2.f32 %v1239_v37 }
 0xb12   :  { %v1621_v38 = vpop.eup %1620 }
 0xb13   :  { %v1241_v39 = vsel %vm1230_vm3, %v1621_v38, 0.0 }
 0xb14   :  { %v1242_v40 = vrot.slane %v1241_v39, 4 }
 0xb16   :  { %v1243_v41 = vadd.f32 %v1242_v40, %v1241_v39 }
 0xb18   :  { %v1244_v42 = vrot.slane %v1243_v41, 2 }
 0xb1a   :  { %v1245_v43 = vadd.f32 %v1244_v42, %v1243_v41 }
 0xb1c   :  { %v1246_v44 = vrot.slane %v1245_v43, 1 }
 0xb1e   :  { %v1247_v45 = vadd.f32 %v1246_v44, %v1245_v43 }
 0xb20   :  { %1622 = vrcp.f32 %v1247_v45 }
 0xb2a   :  { %v1623_v46 = vpop.eup %1622 }
 0xb2b   :  { %v1249_v47 = vmul.f32 %v1623_v46, %v1621_v38 }
 0xb2d   :  { %1250 = vst.msk [vmem:[#allocation2] sm:$0x3] %vm1230_vm3, %v1249_v47 }
 0xb2e   :  { %1639 = shalt.err (!%p1636_p4)
}
 0xb2f   :  { %s1640_s20 = scalar_lea.hbm %s2094_s3, 32 }
 0xb30   :  { %p1641_p5 = scmp.ne.s32.totalorder %s2094_s3, %s1640_s20  ;;  %p1644_p6 = scmp.lt.u32.totalorder %s1640_s20, %s2094_s3 }
 0xb32   :  { %p1646_p7 = pnand %p1644_p6, %p1641_p5 }
 0xb34   :  { %1649 = shalt.err (!%p1646_p7)
}
 0xb35   :  { %1260 = dma.vmem_to_hbm [thread:$0]  %s1258_s13, 32, %s2094_s3, [#allocation3]  }
 0xb36   :  { %1650 = dma.done.wait [#allocation3], 32  }
 0xb37   :  { %1651 = vsyncadd [#allocation3], 4294967264 }
 0xb38   :  { %1264 = vsyncpa [#allocation3], 1 }

</bundles_post_ra>
